<compile_context>
chip_gen: v7x
topology: tpu7x:2x2x1
jax: 0.10.0
libtpu: 0.0.40
codegen_flags: <defaults>
</compile_context>

<pallas_src>
import math
import numpy as np

import jax
import jax.numpy as jnp
from jax import lax
from jax.experimental import pallas as pl
from jax.experimental.pallas import tpu as pltpu

_BIG = 1e30              # python float literal, never a captured constant
_PAIR_PANEL = 32         # max key segments per DTW grid step (multiple of 8 sublanes)
_LINEAR_ROW_TILE = 256
_LINEAR_COL_TILE = 512   # multiple of 128


def _round_up(x, m):
    return -(-x // m) * m


# -----------------------------------------------------------------------------
# Kernel 1: exact DTW, one query segment x a (P, n_pad) panel of key segments.
# -----------------------------------------------------------------------------
def _make_dtw_kernel(n, n_pad):
    shifts = []
    s = 1
    while s < n:
        shifts.append(s)
        s *= 2

    def kernel(q_smem, k_ref, o_ref):
        i_q = pl.program_id(1)                            # fast grid axis = query segment
        y = k_ref[...]                                    # (P, n_pad) key panel (resident)
        p = y.shape[0]

        # Hoisted once per grid step (never rebuilt inside the DP loop):
        lane = lax.broadcasted_iota(jnp.int32, (p, n_pad), 1)
        masks = [lane < s_ for s_ in shifts]
        mask1 = lane < 1
        zeros = jnp.zeros((p, n_pad), jnp.float32)
        bigs = jnp.full((p, n_pad), _BIG, jnp.float32)

        def shift1(x, fill):
            # out[:, j] = x[:, j-1] for j>=1 else fill; XLU roll + one VPU select.
            return jnp.where(mask1, fill, pltpu.roll(x, shift=1, axis=1))

        def prefix_sum(x):
            for s_, m_ in zip(shifts, masks):
                x = x + jnp.where(m_, zeros, pltpu.roll(x, shift=s_, axis=1))
            return x

        def prefix_min(x):
            for s_, m_ in zip(shifts, masks):
                x = jnp.minimum(x, jnp.where(m_, bigs, pltpu.roll(x, shift=s_, axis=1)))
            return x

        base = i_q * n_pad

        # Row 0:  D[0, j] = cumsum_j |x_0 - y_j|
        x0 = q_smem[base]
        d0 = prefix_sum(jnp.abs(x0 - y))
        # Software pipeline: cumulative costs of row 1 computed ahead of the loop.
        x1 = q_smem[base + min(1, n - 1)]
        s1 = prefix_sum(jnp.abs(x1 - y))

        # Row recurrence as a min-plus prefix scan:
        #   m[k]   = min(D[i-1, k], D[i-1, k-1])
        #   D[i,j] = S[j] + min_{k<=j} (m[k] - S[k-1]),   S[j] = sum_{l<=j} |x_i - y_l|
        def body(i, carry):
            d_prev, s_cum = carry                         # s_cum is for row i
            m = jnp.minimum(d_prev, shift1(d_prev, bigs))
            t = m - shift1(s_cum, zeros)
            d_i = s_cum + prefix_min(t)
            # Prefetch the next row's prefix sum; independent of the min-plus chain,
            # so the LLO scheduler interleaves both chains across the VALU slots.
            x_next = q_smem[base + jnp.minimum(i + 1, n - 1)]
            s_next = prefix_sum(jnp.abs(x_next - y))
            return d_i, s_next

        d_last, _ = lax.fori_loop(1, n, body, (d0, s1))
        dist = d_last[:, n - 1:n]                         # (P, 1) = D[n-1, n-1] per pair
        o_ref[...] = jnp.broadcast_to(dist[None, None], (1, 1, p, 128))

    return kernel


# -----------------------------------------------------------------------------
# Kernel 2: V_seg = softmax(scale * dist) @ seg_values  (softmax fused, per M tile).
# -----------------------------------------------------------------------------
def _make_attn_matmul_kernel(scale):
    scale = float(scale)

    def kernel(dist_ref, v_ref, o_ref):
        s = scale * dist_ref[...]
        m = jnp.max(s, axis=-1, keepdims=True)
        e = jnp.exp(s - m)
        a = e / jnp.sum(e, axis=-1, keepdims=True)
        o_ref[...] = jnp.dot(a, v_ref[...], preferred_element_type=jnp.float32)

    return kernel


def _make_softmax_kernel(scale):
    scale = float(scale)

    def kernel(dist_ref, a_ref):
        s = scale * dist_ref[...]
        m = jnp.max(s, axis=-1, keepdims=True)
        e = jnp.exp(s - m)
        a_ref[...] = e / jnp.sum(e, axis=-1, keepdims=True)

    return kernel


# -----------------------------------------------------------------------------
# Kernel 3: (row, col)-tiled linear layer  y = x @ w + b  with bf16 MXU operands.
# -----------------------------------------------------------------------------
def _linear_kernel(x_ref, w_ref, b_ref, o_ref):
    o_ref[...] = (jnp.dot(x_ref[...], w_ref[...], preferred_element_type=jnp.float32)
                  + b_ref[...])


def _linear(x, w, b, *, row_tile=_LINEAR_ROW_TILE, col_tile=_LINEAR_COL_TILE):
    r, d_in = x.shape
    d_out = w.shape[1]
    x = jnp.asarray(x, jnp.bfloat16)
    w = jnp.asarray(w, jnp.bfloat16)
    b = jnp.asarray(b, jnp.float32)

    tr = min(row_tile, _round_up(r, 8))
    r_pad = _round_up(r, tr)
    tc = d_out if d_out <= col_tile else col_tile
    c_pad = _round_up(d_out, tc)
    if r_pad != r:
        x = jnp.pad(x, ((0, r_pad - r), (0, 0)))
    if c_pad != d_out:
        w = jnp.pad(w, ((0, 0), (0, c_pad - d_out)))
        b = jnp.pad(b, ((0, 0), (0, c_pad - d_out)))

    y = pl.pallas_call(
        _linear_kernel,
        out_shape=jax.ShapeDtypeStruct((r_pad, c_pad), jnp.float32),
        grid=(r_pad // tr, c_pad // tc),
        in_specs=[
            pl.BlockSpec((tr, d_in), lambda i, j: (i, 0)),
            pl.BlockSpec((d_in, tc), lambda i, j: (0, j)),
            pl.BlockSpec((1, tc), lambda i, j: (0, j)),
        ],
        out_specs=pl.BlockSpec((tr, tc), lambda i, j: (i, j)),
        compiler_params=pltpu.CompilerParams(
            dimension_semantics=("parallel", "parallel")),
    )(x, w, b)
    return y[:r, :d_out]


# -----------------------------------------------------------------------------
# SegmentCorrelation_DWT.forward (inner attention)
# -----------------------------------------------------------------------------
def segment_correlation_dwt_forward(queries, keys, values, *, factor=1, scale=None,
                                    head_flag=True, output_attention=False):
    queries = jnp.asarray(queries, jnp.float32)
    keys = jnp.asarray(keys, jnp.float32)
    values = jnp.asarray(values, jnp.float32)

    B, L_q, H, D_q = queries.shape
    _, L_k, _, D_k = keys.shape
    _, L_v, _, D_v = values.shape
    L_s = factor
    scale = (1.0 / math.sqrt(L_s)) if scale is None else float(scale)
    assert L_k == L_v and D_q == D_k == D_v and L_s <= L_q and L_s <= L_v

    add_q = L_q % L_s
    add_v = L_v % L_s
    if head_flag:
        queries = queries[:, add_q:]
        keys = keys[:, add_v:]
        values = values[:, add_v:]
        # Faithful to the PyTorch source: addition_Q sliced from the *trimmed* queries.
        addition_Q = queries[:, :add_q] if add_q != 0 else None
    else:
        queries = queries[:, :L_q - add_q] if add_q != 0 else queries
        keys = keys[:, :L_k - add_v] if add_v != 0 else keys
        values = values[:, :L_v - add_v] if add_v != 0 else values
        addition_Q = queries[:, queries.shape[1] - add_q:] if add_q != 0 else None

    seg_q = queries.reshape(B, -1, L_s, H, D_q)
    seg_k = keys.reshape(B, -1, L_s, H, D_k)
    seg_v = values.reshape(B, -1, L_s, H, D_v)
    N_q, N_k, N_v = seg_q.shape[1], seg_k.shape[1], seg_v.shape[1]

    # Flatten like `seg_queries[:, i].flatten()` in the source: (B, L_s, H, D) order.
    n = B * L_s * H * D_q
    n_pad = _round_up(n, 128)                 # lane-dense, vreg-aligned panels
    q_flat = jnp.transpose(seg_q, (1, 0, 2, 3, 4)).reshape(N_q, n)
    k_flat = jnp.transpose(seg_k, (1, 0, 2, 3, 4)).reshape(N_k, n)
    if n_pad != n:
        q_flat = jnp.pad(q_flat, ((0, 0), (0, n_pad - n)))
        k_flat = jnp.pad(k_flat, ((0, 0), (0, n_pad - n)))

    # ---- DTW distances.  Grid = (key panels, query segments); the key panel only
    #      depends on the slow axis so it stays resident across all query segments.
    P = min(_PAIR_PANEL, _round_up(N_k, 8))
    N_k_pad = _round_up(N_k, P)
    N_kb = N_k_pad // P
    if N_k_pad != N_k:
        k_flat = jnp.pad(k_flat, ((0, N_k_pad - N_k), (0, 0)))

    q_flat_1d = q_flat.reshape(-1)            # 1-D SMEM: padding stays O(N_q * n_pad)

    dist4 = pl.pallas_call(
        _make_dtw_kernel(n, n_pad),
        out_shape=jax.ShapeDtypeStruct((N_q, N_kb, P, 128), jnp.float32),
        grid=(N_kb, N_q),
        in_specs=[
            pl.BlockSpec(memory_space=pltpu.MemorySpace.SMEM),    # query scalars
            pl.BlockSpec((P, n_pad), lambda kb, qi: (kb, 0)),     # resident key panel
        ],
        out_specs=pl.BlockSpec((1, 1, P, 128), lambda kb, qi: (qi, kb, 0, 0)),
        compiler_params=pltpu.CompilerParams(
            dimension_semantics=("parallel", "parallel")),
    )(q_flat_1d, k_flat)
    dist = dist4[:, :, :, 0].reshape(N_q, N_k_pad)[:, :N_k]

    # ---- V_seg = softmax(scale * dist) @ seg_values, lane-dense tiled over M.
    M = B * L_s * H * D_v
    v_flat = jnp.transpose(seg_v, (1, 0, 2, 3, 4)).reshape(N_v, M)
    tm_budget = max(128, (6 * 1024 * 1024 // (8 * max(N_v + N_q, 1))) // 128 * 128)
    TM = min(_round_up(M, 128), tm_budget, 16384)
    M_pad = _round_up(M, TM)
    if M_pad != M:
        v_flat = jnp.pad(v_flat, ((0, 0), (0, M_pad - M)))

    v_out_flat = pl.pallas_call(
        _make_attn_matmul_kernel(scale),
        out_shape=jax.ShapeDtypeStruct((N_q, M_pad), jnp.float32),
        grid=(M_pad // TM,),
        in_specs=[
            pl.BlockSpec((N_q, N_k), lambda m: (0, 0)),
            pl.BlockSpec((N_v, TM), lambda m: (0, m)),
        ],
        out_specs=pl.BlockSpec((N_q, TM), lambda m: (0, m)),
        compiler_params=pltpu.CompilerParams(dimension_semantics=("parallel",)),
    )(dist, v_flat)

    V = v_out_flat[:, :M].reshape(N_q, B, L_s, H, D_v)
    V = jnp.transpose(V, (1, 0, 2, 3, 4)).reshape(B, N_q * L_s, H, D_v)

    if head_flag:
        if addition_Q is not None:
            V = jnp.concatenate([addition_Q, V], axis=1)
    else:
        if addition_Q is not None:
            V = jnp.concatenate([V, addition_Q], axis=1)

    if output_attention:
        a_shared = pl.pallas_call(
            _make_softmax_kernel(scale),
            out_shape=jax.ShapeDtypeStruct((N_q, N_k), jnp.float32),
        )(dist)
        A = jnp.broadcast_to(a_shared[None, None], (B, H, N_q, N_k))
        return V, A
    return V, None


# -----------------------------------------------------------------------------
# AttentionLayer_DS_integ.forward
# -----------------------------------------------------------------------------
def init_attention_layer_params(key, d_model, n_heads):
    d_inner = d_model * n_heads
    ks = jax.random.split(key, 8)

    def lin(kw, kb, d_in, d_out):
        w = jax.random.normal(kw, (d_in, d_out), jnp.float32) / math.sqrt(d_in)
        b = jax.random.normal(kb, (1, d_out), jnp.float32) * 0.1
        return w, b

    w_q, b_q = lin(ks[0], ks[1], d_model, d_inner)
    w_k, b_k = lin(ks[2], ks[3], d_model, d_inner)
    w_v, b_v = lin(ks[4], ks[5], d_model, d_inner)
    w_o, b_o = lin(ks[6], ks[7], d_inner, d_model)
    return dict(w_q=w_q, b_q=b_q, w_k=w_k, b_k=b_k,
                w_v=w_v, b_v=b_v, w_o=w_o, b_o=b_o)


def attention_layer_ds_integ_forward(params, queries, keys, values, attn_mask=None,
                                     tau=None, delta=None, *, n_heads, factor=1,
                                     scale=None, head_flag=True,
                                     output_attention=False):
    del attn_mask, tau, delta   # unused by the SegmentCorrelation_DWT inner attention
    queries = jnp.asarray(queries, jnp.float32)
    keys = jnp.asarray(keys, jnp.float32)
    values = jnp.asarray(values, jnp.float32)
    B, N, d_model = queries.shape
    H = n_heads

    q = _linear(queries.reshape(B * N, d_model), params["w_q"], params["b_q"]).reshape(B, N, H, -1)
    k = _linear(keys.reshape(B * N, d_model), params["w_k"], params["b_k"]).reshape(B, N, H, -1)
    v = _linear(values.reshape(B * N, d_model), params["w_v"], params["b_v"]).reshape(B, N, H, -1)

    out, attn = segment_correlation_dwt_forward(
        q, k, v, factor=factor, scale=scale, head_flag=head_flag,
        output_attention=output_attention)

    out = out.reshape(B, N, -1)
    y = _linear(out.reshape(B * N, -1), params["w_o"], params["b_o"]).reshape(B, N, d_model)
    return y, attn


# -----------------------------------------------------------------------------
# Pure-numpy reference (exact-DTW version of the module's intended forward).
# The reference applies the same bf16 quantization to matmul operands as the
# kernel does, so the comparison isolates kernel logic from bf16 quantization.
# -----------------------------------------------------------------------------
def _quant_bf16(a):
    return np.asarray(
        jnp.asarray(a, jnp.float32).astype(jnp.bfloat16).astype(jnp.float32), np.float64)


def _dtw_exact_np(x, y):
    n, m = len(x), len(y)
    D = np.full((n + 1, m + 1), np.inf, dtype=np.float64)
    D[0, 0] = 0.0
    for i in range(1, n + 1):
        xi = float(x[i - 1])
        for j in range(1, m + 1):
            c = abs(xi - float(y[j - 1]))
            D[i, j] = c + min(D[i - 1, j], D[i, j - 1], D[i - 1, j - 1])
    return D[n, m]


def _reference_inner(q, k, v, factor, scale=None):
    B, L_q, H, D_q = q.shape
    L_s = factor
    scale = (1.0 / math.sqrt(L_s)) if scale is None else scale
    add_q = L_q % L_s
    add_v = v.shape[1] % L_s
    q = q[:, add_q:]
    k = k[:, add_v:]
    v = v[:, add_v:]
    addition_Q = q[:, :add_q] if add_q != 0 else None

    seg_q = q.reshape(B, -1, L_s, H, D_q)
    seg_k = k.reshape(B, -1, L_s, H, D_q)
    seg_v = v.reshape(B, -1, L_s, H, v.shape[-1])
    N_q, N_k = seg_q.shape[1], seg_k.shape[1]

    dist = np.zeros((N_q, N_k), dtype=np.float64)
    for i in range(N_q):
        for j in range(N_k):
            dist[i, j] = _dtw_exact_np(seg_q[:, i].reshape(-1), seg_k[:, j].reshape(-1))

    s = scale * dist
    e = np.exp(s - s.max(axis=-1, keepdims=True))
    A = e / e.sum(axis=-1, keepdims=True)

    V = np.einsum("ij,bjlhd->bilhd", A, seg_v).reshape(B, -1, H, v.shape[-1])
    if addition_Q is not None:
        V = np.concatenate([addition_Q, V], axis=1)
    A_full = np.broadcast_to(A[None, None], (B, H, N_q, N_k))
    return V, A_full


def _reference_layer(params, q, k, v, n_heads, factor, scale=None):
    q = np.asarray(q, np.float64)
    k = np.asarray(k, np.float64)
    v = np.asarray(v, np.float64)
    B, N, d_model = q.shape

    def lin(x, w, b):
        return (_quant_bf16(x).reshape(-1, x.shape[-1]) @ _quant_bf16(w)
                + np.asarray(b, np.float64))

    Q = lin(q, params["w_q"], params["b_q"]).reshape(B, N, n_heads, -1)
    K = lin(k, params["w_k"], params["b_k"]).reshape(B, N, n_heads, -1)
    V = lin(v, params["w_v"], params["b_v"]).reshape(B, N, n_heads, -1)

    out, attn = _reference_inner(Q, K, V, factor, scale)
    out = out.reshape(B, N, -1)
    y = (_quant_bf16(out).reshape(-1, out.shape[-1]) @ _quant_bf16(params["w_o"])
         + np.asarray(params["b_o"], np.float64)).reshape(B, N, d_model)
    return y.astype(np.float32), np.asarray(attn, np.float32)


if __name__ == "__main__":
    key = jax.random.PRNGKey(0)
    B, N, d_model, H = 2, 9, 8, 2     # N % factor = 1 exercises the addition_Q path
    factor = 4

    k_par, k_q, k_k, k_v = jax.random.split(key, 4)
    params = init_attention_layer_params(k_par, d_model, H)
    queries = jax.random.normal(k_q, (B, N, d_model), jnp.float32)
    keys = jax.random.normal(k_k, (B, N, d_model), jnp.float32)
    values = jax.random.normal(k_v, (B, N, d_model), jnp.float32)

    y, A = attention_layer_ds_integ_forward(
        params, queries, keys, values, None,
        n_heads=H, factor=factor, head_flag=True, output_attention=True)
    y, A = jax.block_until_ready((y, A))

    y_ref, A_ref = _reference_layer(params, np.asarray(queries), np.asarray(keys),
                                    np.asarray(values), H, factor)
    np.testing.assert_allclose(np.asarray(A), A_ref, rtol=2e-2, atol=2e-2)
    np.testing.assert_allclose(np.asarray(y), y_ref, rtol=2e-2, atol=2e-2)

    print("KERNEL_OK")
</pallas_src>

<mosaic_0001>
module attributes {stable_mosaic.version = 11 : i64} {
  func.func @_linear_kernel(%arg0: i32, %arg1: i32, %arg2: memref<24x8xbf16, #tpu.memory_space<vmem>>, %arg3: memref<8x16xbf16, #tpu.memory_space<vmem>>, %arg4: memref<1x16xf32, #tpu.memory_space<vmem>>, %arg5: memref<24x16xf32, #tpu.memory_space<vmem>>) attributes {dimension_semantics = [#tpu.dimension_semantics<parallel>, #tpu.dimension_semantics<parallel>], iteration_bounds = array<i64: 1, 1>, scalar_prefetch = 0 : i64, scratch_operands = 0 : i64, tpu.core_type = #tpu.core_type<tc>, window_params = [{transform_indices = @transform_0, window_bounds = array<i64: 24, 8>}, {transform_indices = @transform_1, window_bounds = array<i64: 8, 16>}, {transform_indices = @transform_2, window_bounds = array<i64: 1, 16>}, {transform_indices = @transform_3, window_bounds = array<i64: 24, 16>}]} {
    %c0 = arith.constant 0 : index
    %c0_0 = arith.constant 0 : index
    %0 = vector.load %arg2[%c0, %c0_0] : memref<24x8xbf16, #tpu.memory_space<vmem>>, vector<24x8xbf16>
    %c0_1 = arith.constant 0 : index
    %c0_2 = arith.constant 0 : index
    %1 = vector.load %arg3[%c0_1, %c0_2] : memref<8x16xbf16, #tpu.memory_space<vmem>>, vector<8x16xbf16>
    %cst = arith.constant dense<0.000000e+00> : vector<24x16xf32>
    %2 = tpu.matmul %0, %1, %cst {dimension_numbers = #tpu.dot_dimension_numbers<[1], [0], [0], [1], [0, 0, 1, 1], [], []>} : vector<24x8xbf16>, vector<8x16xbf16>, vector<24x16xf32> -> vector<24x16xf32>
    %c0_3 = arith.constant 0 : index
    %c0_4 = arith.constant 0 : index
    %3 = vector.load %arg4[%c0_3, %c0_4] : memref<1x16xf32, #tpu.memory_space<vmem>>, vector<1x16xf32>
    %4 = vector.broadcast %3 : vector<1x16xf32> to vector<24x16xf32>
    %5 = arith.addf %2, %4 : vector<24x16xf32>
    %c0_5 = arith.constant 0 : index
    %c0_6 = arith.constant 0 : index
    %6 = vector.load %arg5[%c0_5, %c0_6] : memref<24x16xf32, #tpu.memory_space<vmem>>, vector<24x16xf32>
    tpu.vector_store %arg5[%c0_5, %c0_6], %5 {strides = array<i32>} : memref<24x16xf32, #tpu.memory_space<vmem>>, vector<24x16xf32>,
    return
  }
  func.func @transform_0(%arg0: i32, %arg1: i32) -> (i32, i32) {
    %c0_i32 = arith.constant 0 : i32
    %c0_i32_0 = arith.constant 0 : i32
    return %arg0, %c0_i32 : i32, i32
  }
  func.func @transform_1(%arg0: i32, %arg1: i32) -> (i32, i32) {
    %c0_i32 = arith.constant 0 : i32
    %c0_i32_0 = arith.constant 0 : i32
    return %c0_i32, %arg1 : i32, i32
  }
  func.func @transform_2(%arg0: i32, %arg1: i32) -> (i32, i32) {
    %c0_i32 = arith.constant 0 : i32
    %c0_i32_0 = arith.constant 0 : i32
    return %c0_i32, %arg1 : i32, i32
  }
  func.func @transform_3(%arg0: i32, %arg1: i32) -> (i32, i32) {
    %c0_i32 = arith.constant 0 : i32
    return %arg0, %arg1 : i32, i32
  }
}

</mosaic_0001>

<bundles_post_ra>
// kernel: tpu_custom_call.1
= control target key start
LH: loop header
LB: loop body
LE: loop exit
PB: predicated region body
PF: predicated region fallthrough
CT: control target
= control target key end

     0   :  { %vm41_vm0 = vcmask 1043456   ;;  %vm34_vm1 = vcmask 64512   ;;  %vm93_vm2 = vcmask 130048   ;;  %s159_s1 = inlined_call_operand.vmem [shape: bf16[8,16], index: 1, kind: input, shape index: {}]   ;;  %s160_s0 = inlined_call_operand.vmem [shape: bf16[24,8], index: 0, kind: input, shape index: {}]   ;;  %s161_s2 = inlined_call_operand.vmem [shape: f32[1,16], index: 2, kind: input, shape index: {}]   ;;  %s162_s3 = inlined_call_operand.vmem [shape: f32[24,16], index: 3, kind: output, shape index: {}]  }
   0x1   :  { %v18_v0 = vld [vmem:[%s159_s1] sm:$0xf]  ;;  %v117_v3 = vld [vmem:[%s160_s0 + $0x8] ss:$0 sps:$4 sm:$0xff]  }
   0x2   :  { %115 = vmatprep.subr.msk.bf16.mxu0 %vm41_vm0, %v18_v0  ;;  %v43_v1 = vsel %vm41_vm0, %v18_v0, 0  ;;  %v116_v2 = vld [vmem:[%s160_s0] sm:$0xff]  }
   0x3   :  { %110 = vmatpush3.bf16.msra.mxu0 %v43_v1  ;;  %111 = vmatprep.mubr.msk.bf16.mxu0 %vm34_vm1, %v116_v2  ;;  %v101_v4 = vld [vmem:[%s161_s2] ss:$0 sm:$0xff] }
   0x6   :  { %112 = vmatmul.mubr.msk.bf16.vlgmr.msra.gmra.mrb[0].mxu0 %vm34_vm1, %v117_v3 }
  0xd9   :  { %v113_v5 = vpop.f32.mrb[0].mxu0 }
  0xda   :  { %v88_v6 = vadd.f32 %v113_v5, %v101_v4  ;;  %v79_v7 = vpop.f32.mrb[1].mxu0 }
  0xdb   :  { %v80_v8 = vadd.f32 %v101_v4, %v79_v7  ;;  %v114_v9 = vpop.f32.mrb[2].mxu0 }
  0xdc   :  { %96 = vst.msk [vmem:[%s162_s3 + $0x10] sm:$0xff] %vm93_vm2, %v88_v6  ;;  %v82_v10 = vpop.f32.mrb[3].mxu0 }
  0xdd   :  { %94 = vst.msk [vmem:[%s162_s3] sm:$0xff] %vm93_vm2, %v80_v8  ;;  %v83_v11 = vadd.f32 %v101_v4, %v82_v10 }
  0xdf   :  { %95 = vst.msk [vmem:[%s162_s3 + $0x8] sm:$0xff] %vm93_vm2, %v83_v11 }

</bundles_post_ra>
